<compile_context>
chip_gen: v7x
topology: tpu7x:2x2x1
jax: 0.10.0
libtpu: 0.0.40
codegen_flags: <defaults>
</compile_context>

<pallas_src>
import functools

import jax
import jax.numpy as jnp
import numpy as np
from jax.experimental import pallas as pl
from jax.experimental.pallas import tpu as pltpu


def _round_up(x, m):
    return ((x + m - 1) // m) * m


def _gcn_fused_kernel(adj_ref, w1_ref, b1_ref, w2_ref, b2_ref, o_ref):
    """Fused 2-layer GCN:  out = adj @ (relu(adj @ W1 + b1) @ W2) + b2."""
    adj = adj_ref[...]
    # Layer 1 (identity feature matrix folded away): h = relu(adj @ W1 + b1)
    h = jnp.dot(adj, w1_ref[...], preferred_element_type=jnp.float32)
    h = jnp.maximum(h + b1_ref[...], 0.0)
    # dropout(p=0.3) in eval mode == identity
    # Layer 2: out = adj @ (h @ W2) + b2
    s = jnp.dot(h, w2_ref[...], preferred_element_type=jnp.float32)
    out = jnp.dot(adj, s, preferred_element_type=jnp.float32) + b2_ref[...]
    o_ref[...] = out.astype(o_ref.dtype)


@functools.partial(jax.jit, static_argnames=())
def gcn_forward(adj_norm, w1, b1, w2, b2):
    """Full GCN forward in a single pallas_call (no grid, full VMEM blocks)."""
    n = adj_norm.shape[0]
    e = w1.shape[1]

    n_pad = _round_up(n, 8)      # sublane alignment
    e_pad = _round_up(e, 128)    # lane-dense output slab

    adj_p = jnp.pad(adj_norm.astype(jnp.float32),
                    ((0, n_pad - n), (0, n_pad - n)))
    w1_p = jnp.pad(w1.astype(jnp.float32), ((0, n_pad - n), (0, e_pad - e)))
    b1_p = jnp.pad(b1.astype(jnp.float32).reshape(1, e), ((0, 0), (0, e_pad - e)))
    w2_p = jnp.pad(w2.astype(jnp.float32), ((0, e_pad - e), (0, e_pad - e)))
    b2_p = jnp.pad(b2.astype(jnp.float32).reshape(1, e), ((0, 0), (0, e_pad - e)))

    flops = 2 * n_pad * n_pad * e_pad        # adj @ W1
    flops += 2 * n_pad * e_pad * e_pad       # h @ W2
    flops += 2 * n_pad * n_pad * e_pad       # adj @ s
    bytes_accessed = 4 * (
        n_pad * n_pad            # adj
        + n_pad * e_pad          # W1
        + e_pad                  # b1
        + e_pad * e_pad          # W2
        + e_pad                  # b2
        + n_pad * e_pad          # out
    )

    vmem_spec = pl.BlockSpec(memory_space=pltpu.MemorySpace.VMEM)
    out_p = pl.pallas_call(
        _gcn_fused_kernel,
        out_shape=jax.ShapeDtypeStruct((n_pad, e_pad), jnp.float32),
        in_specs=[vmem_spec, vmem_spec, vmem_spec, vmem_spec, vmem_spec],
        out_specs=vmem_spec,
        cost_estimate=pl.CostEstimate(
            flops=flops, transcendentals=0, bytes_accessed=bytes_accessed
        ),
    )(adj_p, w1_p, b1_p, w2_p, b2_p)
    return out_p[:n, :e]


def normalize_adj(mx):
    """Row-normalize matrix, matching GCN.normalize (numpy glue code)."""
    rowsum = np.asarray(mx.sum(1), dtype=np.float64)
    r_inv = np.power(rowsum, -1.0).flatten()
    r_inv[np.isinf(r_inv)] = 0.0
    r_mat_inv = np.diagflat(r_inv)
    return r_mat_inv.dot(mx)


if __name__ == "__main__":
    voc_size = 32
    emd_dim = 16

    key = jax.random.PRNGKey(0)
    k_adj, k_w1, k_b1, k_w2, k_b2 = jax.random.split(key, 5)

    # Synthetic symmetric binary adjacency.
    adj_raw = (jax.random.uniform(k_adj, (voc_size, voc_size)) > 0.8).astype(jnp.float32)
    adj_raw = np.array(jnp.maximum(adj_raw, adj_raw.T))
    np.fill_diagonal(adj_raw, 0.0)

    # adj = normalize(adj + I), as in GCN.__init__
    adj_norm = jnp.asarray(
        normalize_adj(adj_raw + np.eye(voc_size)), dtype=jnp.float32
    )

    # GraphConvolution init: uniform(-stdv, stdv), stdv = 1/sqrt(out_features)
    stdv1 = 1.0 / float(np.sqrt(emd_dim))
    w1 = jax.random.uniform(k_w1, (voc_size, emd_dim), minval=-stdv1, maxval=stdv1,
                            dtype=jnp.float32)
    b1 = jax.random.uniform(k_b1, (emd_dim,), minval=-stdv1, maxval=stdv1,
                            dtype=jnp.float32)
    stdv2 = 1.0 / float(np.sqrt(emd_dim))
    w2 = jax.random.uniform(k_w2, (emd_dim, emd_dim), minval=-stdv2, maxval=stdv2,
                            dtype=jnp.float32)
    b2 = jax.random.uniform(k_b2, (emd_dim,), minval=-stdv2, maxval=stdv2,
                            dtype=jnp.float32)

    node_embedding = gcn_forward(adj_norm, w1, b1, w2, b2)
    node_embedding = jax.block_until_ready(node_embedding)

    # Pure-JAX reference check (original formulation with the identity x).
    x_eye = jnp.eye(voc_size, dtype=jnp.float32)
    h_ref = jnp.maximum(adj_norm @ (x_eye @ w1) + b1, 0.0)
    ref = adj_norm @ (h_ref @ w2) + b2
    assert node_embedding.shape == (voc_size, emd_dim)
    assert jnp.allclose(node_embedding, ref, atol=1e-5, rtol=1e-5)

    print("KERNEL_OK")
</pallas_src>

<mosaic_0001>
module attributes {stable_mosaic.version = 11 : i64} {
  func.func @_gcn_fused_kernel(%arg0: memref<32x32xf32, #tpu.memory_space<vmem>>, %arg1: memref<32x128xf32, #tpu.memory_space<vmem>>, %arg2: memref<1x128xf32, #tpu.memory_space<vmem>>, %arg3: memref<128x128xf32, #tpu.memory_space<vmem>>, %arg4: memref<1x128xf32, #tpu.memory_space<vmem>>, %arg5: memref<32x128xf32, #tpu.memory_space<vmem>>) attributes {dimension_semantics = [], scalar_prefetch = 0 : i64, scratch_operands = 0 : i64, tpu.core_type = #tpu.core_type<tc>} {
    %c0 = arith.constant 0 : index
    %c0_0 = arith.constant 0 : index
    %0 = vector.load %arg0[%c0, %c0_0] : memref<32x32xf32, #tpu.memory_space<vmem>>, vector<32x32xf32>
    %c0_1 = arith.constant 0 : index
    %c0_2 = arith.constant 0 : index
    %1 = vector.load %arg1[%c0_1, %c0_2] : memref<32x128xf32, #tpu.memory_space<vmem>>, vector<32x128xf32>
    %cst = arith.constant dense<0.000000e+00> : vector<32x128xf32>
    %2 = tpu.matmul %0, %1, %cst {dimension_numbers = #tpu.dot_dimension_numbers<[1], [0], [0], [1], [0, 0, 1, 1], [], []>} : vector<32x32xf32>, vector<32x128xf32>, vector<32x128xf32> -> vector<32x128xf32>
    %c0_3 = arith.constant 0 : index
    %c0_4 = arith.constant 0 : index
    %3 = vector.load %arg2[%c0_3, %c0_4] : memref<1x128xf32, #tpu.memory_space<vmem>>, vector<1x128xf32>
    %4 = vector.broadcast %3 : vector<1x128xf32> to vector<32x128xf32>
    %5 = arith.addf %2, %4 : vector<32x128xf32>
    %cst_5 = arith.constant 0.000000e+00 : f32
    %6 = vector.broadcast %cst_5 : f32 to vector<32x128xf32>
    %7 = arith.maximumf %5, %6 : vector<32x128xf32>
    %c0_6 = arith.constant 0 : index
    %c0_7 = arith.constant 0 : index
    %8 = vector.load %arg3[%c0_6, %c0_7] : memref<128x128xf32, #tpu.memory_space<vmem>>, vector<128x128xf32>
    %cst_8 = arith.constant dense<0.000000e+00> : vector<32x128xf32>
    %9 = tpu.matmul %7, %8, %cst_8 {dimension_numbers = #tpu.dot_dimension_numbers<[1], [0], [0], [1], [0, 0, 1, 1], [], []>} : vector<32x128xf32>, vector<128x128xf32>, vector<32x128xf32> -> vector<32x128xf32>
    %cst_9 = arith.constant dense<0.000000e+00> : vector<32x128xf32>
    %10 = tpu.matmul %0, %9, %cst_9 {dimension_numbers = #tpu.dot_dimension_numbers<[1], [0], [0], [1], [0, 0, 1, 1], [], []>} : vector<32x32xf32>, vector<32x128xf32>, vector<32x128xf32> -> vector<32x128xf32>
    %c0_10 = arith.constant 0 : index
    %c0_11 = arith.constant 0 : index
    %11 = vector.load %arg4[%c0_10, %c0_11] : memref<1x128xf32, #tpu.memory_space<vmem>>, vector<1x128xf32>
    %12 = vector.broadcast %11 : vector<1x128xf32> to vector<32x128xf32>
    %13 = arith.addf %10, %12 : vector<32x128xf32>
    %c0_12 = arith.constant 0 : index
    %c0_13 = arith.constant 0 : index
    %14 = vector.load %arg5[%c0_12, %c0_13] : memref<32x128xf32, #tpu.memory_space<vmem>>, vector<32x128xf32>
    tpu.vector_store %arg5[%c0_12, %c0_13], %13 {strides = array<i32>} : memref<32x128xf32, #tpu.memory_space<vmem>>, vector<32x128xf32>,
    return
  }
}

</mosaic_0001>

<bundles_post_ra>
// kernel: gcn_forward.1
= control target key start
LH: loop header
LB: loop body
LE: loop exit
PB: predicated region body
PF: predicated region fallthrough
CT: control target
= control target key end

     0   :  { %vm35_vm0 = vcmask 261120   ;;  %s634_s1 = inlined_call_operand.vmem [shape: f32[32,128], index: 1, kind: input, shape index: {}]   ;;  %s635_s0 = inlined_call_operand.vmem [shape: f32[32,32], index: 0, kind: input, shape index: {}]   ;;  %s636_s3 = inlined_call_operand.vmem [shape: f32[128,128], index: 3, kind: input, shape index: {}]   ;;  %s637_s2 = inlined_call_operand.vmem [shape: f32[1,128], index: 2, kind: input, shape index: {}]   ;;  %s638_s4 = inlined_call_operand.vmem [shape: f32[1,128], index: 4, kind: input, shape index: {}]   ;;  %s639_s5 = inlined_call_operand.vmem [shape: f32[32,128], index: 5, kind: output, shape index: {}]  }
   0x1   :  { %v24_v0 = vld [vmem:[%s634_s1] sm:$0xff]  ;;  %v25_v1 = vld [vmem:[%s634_s1 + $0x8] sm:$0xff]  ;;  %v26_v2 = vld [vmem:[%s634_s1 + $0x10] sm:$0xff] }
   0x2   :  { %v450_v3 = vpack.c.bf16 %v25_v1, %v24_v0  ;;  %v27_v4 = vld [vmem:[%s634_s1 + $0x18] sm:$0xff]  ;;  %v20_v5 = vld [vmem:[%s635_s0] sm:$0xff]  ;;  %v138_v8 = vld [vmem:[%s636_s3 + $0x8] sm:$0xff] }
   0x3   :  { %v454_v6 = vpack.c.bf16 %v27_v4, %v26_v2  ;;  %392 = vmatprep.mubr.msk.f32.mxu0 %vm35_vm0, %v20_v5  ;;  %v137_v7 = vld [vmem:[%s636_s3] sm:$0xff]  ;;  %v139_v9 = vld [vmem:[%s636_s3 + $0x10] sm:$0xff]  ;;  %v140_v10 = vld [vmem:[%s636_s3 + $0x18] sm:$0xff] }
   0x4   :  { %451 = vmatprep.subr.bf16.mxu0 %v450_v3  ;;  %v458_v11 = vpack.c.bf16 %v138_v8, %v137_v7  ;;  %v462_v12 = vpack.c.bf16 %v140_v10, %v139_v9  ;;  %v141_v13 = vld [vmem:[%s636_s3 + $0x20] sm:$0xff]  ;;  %v142_v14 = vld [vmem:[%s636_s3 + $0x28] sm:$0xff]  ;;  %v570_v17 = vld [vmem:[%s635_s0 + $0x10] sm:$0xff] }
   0x5   :  { %453 = vmatpush3.bf16.msra.mxu0 %v450_v3  ;;  %v565_v15 = vld [vmem:[%s635_s0 + $0x8] sm:$0xff]  ;;  %v466_v16 = vpack.c.bf16 %v142_v14, %v141_v13  ;;  %v143_v18 = vld [vmem:[%s636_s3 + $0x30] sm:$0xff]  ;;  %v144_v19 = vld [vmem:[%s636_s3 + $0x38] sm:$0xff] }
   0x6   :  { %455 = vmatprep.subr.bf16.mxu0 %v454_v6  ;;  %459 = vmatprep.subr.bf16.mxu1 %v458_v11  ;;  %v23_v20 = vld [vmem:[%s635_s0 + $0x18] sm:$0xff]  ;;  %v470_v21 = vpack.c.bf16 %v144_v19, %v143_v18  ;;  %v145_v22 = vld [vmem:[%s636_s3 + $0x40] sm:$0xff]  ;;  %v146_v23 = vld [vmem:[%s636_s3 + $0x48] sm:$0xff] }
   0x7   :  { %461 = vmatpush3.bf16.msra.mxu1 %v458_v11  ;;  %v474_v24 = vpack.c.bf16 %v146_v23, %v145_v22  ;;  %v147_v25 = vld [vmem:[%s636_s3 + $0x50] sm:$0xff]  ;;  %v148_v26 = vld [vmem:[%s636_s3 + $0x58] sm:$0xff]  ;;  %v149_v28 = vld [vmem:[%s636_s3 + $0x60] sm:$0xff] }
   0x8   :  { %463 = vmatprep.subr.bf16.mxu1 %v462_v12  ;;  %v478_v27 = vpack.c.bf16 %v148_v26, %v147_v25  ;;  %v150_v29 = vld [vmem:[%s636_s3 + $0x68] sm:$0xff]  ;;  %v151_v31 = vld [vmem:[%s636_s3 + $0x70] sm:$0xff]  ;;  %v152_v32 = vld [vmem:[%s636_s3 + $0x78] sm:$0xff] }
   0x9   :  { %457 = vmatpush3.bf16.msra.mxu0 %v454_v6  ;;  %v482_v30 = vpack.c.bf16 %v150_v29, %v149_v28  ;;  %v486_v33 = vpack.c.bf16 %v152_v32, %v151_v31  ;;  %v338_v34 = vld [vmem:[%s637_s2] ss:$0 sm:$0xff] }
   0xa   :  { %v343_v53 = vld [vmem:[%s638_s4] ss:$0 sm:$0xff] }
   0xb   :  { %465 = vmatpush3.bf16.msra.mxu1 %v462_v12 }
   0xc   :  { %393 = vmatmul.mubr.msk.f32.vlgmr.msra.gmra.mrb[0].mxu0 %vm35_vm0, %v565_v15  ;;  %467 = vmatprep.subr.bf16.mxu1 %v466_v16 }
   0xd   :  { %395 = vmatprep.mubr.msk.f32.mxu0 %vm35_vm0, %v570_v17 }
   0xf   :  { %469 = vmatpush3.bf16.msra.mxu1 %v466_v16 }
  0x10   :  { %396 = vmatmul.mubr.msk.f32.gmra.mrb[2].mxu0 %vm35_vm0, %v23_v20  ;;  %471 = vmatprep.subr.bf16.mxu1 %v470_v21 }
  0x11   :  { %444 = vmatprep.mubr.msk.f32.mxu0 %vm35_vm0, %v20_v5 }
  0x13   :  { %473 = vmatpush3.bf16.msra.mxu1 %v470_v21 }
  0x14   :  { %475 = vmatprep.subr.bf16.mxu1 %v474_v24 }
  0x17   :  { %477 = vmatpush3.bf16.msra.mxu1 %v474_v24 }
  0x18   :  { %479 = vmatprep.subr.bf16.mxu1 %v478_v27 }
  0x1b   :  { %481 = vmatpush3.bf16.msra.mxu1 %v478_v27 }
  0x1c   :  { %483 = vmatprep.subr.bf16.mxu1 %v482_v30 }
  0x1f   :  { %485 = vmatpush3.bf16.msra.mxu1 %v482_v30 }
  0x20   :  { %487 = vmatprep.subr.bf16.mxu1 %v486_v33 }
  0x23   :  { %489 = vmatpush3.bf16.msra.mxu1 %v486_v33 }
  0xdf   :  { %v394_v35 = vpop.f32.mrb[0].mxu0 }
  0xe0   :  { %v120_v36 = vadd.f32 %v394_v35, %v338_v34  ;;  %v114_v37 = vpop.f32.mrb[1].mxu0 }
  0xe1   :  { %v115_v38 = vadd.f32 %v338_v34, %v114_v37 }
  0xe2   :  { %v134_v41 = vmax.f32 %v120_v36, 0.0 }
  0xe3   :  { %v397_v39 = vpop.f32.mrb[2].mxu0  ;;  %v133_v40 = vmax.f32 %v115_v38, 0.0 }
  0xe4   :  { %v130_v42 = vadd.f32 %v397_v39, %v338_v34  ;;  %v124_v43 = vpop.f32.mrb[3].mxu0 }
  0xe5   :  { %v125_v44 = vadd.f32 %v338_v34, %v124_v43  ;;  %430 = vmatprep.mubr.f32.mxu1 %v133_v40 }
  0xe6   :  { %431 = vmatmul.mubr.f32.vlgmr.msra.gmra.mrb[0].mxu1 %v134_v41  ;;  %v136_v46 = vmax.f32 %v130_v42, 0.0 }
  0xe7   :  { %v135_v45 = vmax.f32 %v125_v44, 0.0 }
  0xe9   :  { %433 = vmatprep.mubr.f32.mxu1 %v135_v45 }
  0xea   :  { %434 = vmatmul.mubr.f32.gmra.mrb[2].mxu1 %v136_v46 }
 0x1b9   :  { %v432_v47 = vpop.f32.mrb[0].mxu1 }
 0x1ba   :  { %v219_v48 = vpop.f32.mrb[1].mxu1 }
 0x1bb   :  { %v490_v49 = vpack.c.bf16 %v432_v47, %v219_v48 }
 0x1bd   :  { %v435_v50 = vpop.f32.mrb[2].mxu1  ;;  %491 = vmatprep.subr.bf16.mxu0 %v490_v49 }
 0x1be   :  { %v229_v51 = vpop.f32.mrb[3].mxu1  ;;  %493 = vmatpush3.bf16.msra.mxu0 %v490_v49 }
 0x1bf   :  { %v494_v52 = vpack.c.bf16 %v435_v50, %v229_v51 }
 0x1c1   :  { %495 = vmatprep.subr.bf16.mxu0 %v494_v52 }
 0x1c2   :  { %497 = vmatpush3.bf16.msra.mxu0 %v494_v52 }
 0x1c5   :  { %445 = vmatmul.mubr.msk.f32.vlgmr.msra.gmra.mrb[4].mxu0 %vm35_vm0, %v565_v15 }
 0x1c6   :  { %447 = vmatprep.mubr.msk.f32.mxu0 %vm35_vm0, %v570_v17 }
 0x1c9   :  { %448 = vmatmul.mubr.msk.f32.gmra.mrb[6].mxu0 %vm35_vm0, %v23_v20 }
 0x298   :  { %v446_v54 = vpop.f32.mrb[4].mxu0 }
 0x299   :  { %v317_v55 = vadd.f32 %v446_v54, %v343_v53  ;;  %v311_v56 = vpop.f32.mrb[5].mxu0 }
 0x29a   :  { %v312_v57 = vadd.f32 %v343_v53, %v311_v56 }
 0x29b   :  { %331 = vst [vmem:[%s639_s5 + $0x8] sm:$0xff] %v317_v55 }
 0x29c   :  { %330 = vst [vmem:[%s639_s5] sm:$0xff] %v312_v57  ;;  %v449_v58 = vpop.f32.mrb[6].mxu0 }
 0x29d   :  { %v327_v59 = vadd.f32 %v449_v58, %v343_v53  ;;  %v321_v60 = vpop.f32.mrb[7].mxu0 }
 0x29e   :  { %v322_v61 = vadd.f32 %v343_v53, %v321_v60 }
 0x29f   :  { %333 = vst [vmem:[%s639_s5 + $0x18] sm:$0xff] %v327_v59 }
 0x2a0   :  { %332 = vst [vmem:[%s639_s5 + $0x10] sm:$0xff] %v322_v61 }

</bundles_post_ra>
